<compile_context>
chip_gen: v7x
topology: tpu7x:2x2x1
jax: 0.10.0
libtpu: 0.0.40
codegen_flags: <defaults>
</compile_context>

<pallas_src>
import jax
import jax.numpy as jnp
from jax import lax
from jax.experimental import pallas as pl
from jax.experimental.pallas import tpu as pltpu


_VMEM_TARGET_BYTES = 28 * 1024 * 1024   # working-set budget used for tile sizing
_VMEM_LIMIT_CAP = 32 * 1024 * 1024      # scoped-VMEM cap that is valid on v7x too
_IN_BUFS = 3                            # pl.Buffered(3) on the x input (when grid >= 3)
_OUT_BUFS = 2                           # default double-buffered output


def _norm_kernel_f32(s_ref, x_ref, o_ref):
    """32-bit path: all math in f32."""
    s = s_ref[0]                                             # scalar from SMEM
    xf = x_ref[...].astype(jnp.float32)
    sumsq = jnp.sum(xf * xf, axis=-1, keepdims=True)         # XLU lane reduce
    inv = s * lax.rsqrt(sumsq)                               # EUP rsqrt, (rows, 1)
    o_ref[...] = (xf * inv).astype(o_ref.dtype)              # one full-width VPU mul


def _norm_kernel_lowp(s_ref, x_ref, o_ref):
    """16-bit float path: square / multiply in native dtype, accumulate in f32."""
    s = s_ref[0]
    x = x_ref[...]
    sumsq = jnp.sum(x * x, axis=-1, keepdims=True, dtype=jnp.float32)
    inv = (s * lax.rsqrt(sumsq)).astype(x.dtype)             # tiny (rows, 1)
    o_ref[...] = x * inv


def _pick_tile_rows(rows, bytes_per_row, mult):
    """Row-tile size for an HBM-bandwidth-bound kernel.

    bytes_per_row is the full VMEM cost per row (pipeline buffers + compute
    intermediates).  Returns None if even a minimum (mult-row) tile does not
    fit the budget.
    """
    if rows <= mult:
        return rows                      # one block equal to the full row dim
    if bytes_per_row * mult > _VMEM_TARGET_BYTES:
        return None                      # needs feature-axis tiling (fallback)
    t = (_VMEM_TARGET_BYTES // bytes_per_row // mult) * mult
    t = int(max(t, mult))
    rows_up = ((rows + mult - 1) // mult) * mult
    if rows_up <= t:
        # Whole problem fits in one tile: split in two whenever each half is
        # still >= 2 sublane groups so the "parallel" grid axis can shard
        # across v7x's two TensorCores (one extra ~0.35 us step elsewhere).
        half = (((rows_up + 1) // 2 + mult - 1) // mult) * mult
        t = half if half >= 2 * mult else rows_up
    return t


def normalization_layer(x, norm_s):
    """Equivalent of NormalizationLayer.forward.

    x:      array of shape (..., D)
    norm_s: scalar (learnable scale parameter)
    """
    orig_shape = x.shape
    D = orig_shape[-1]
    x2d = x.reshape(-1, D)
    R = x2d.shape[0]
    if R == 0:
        return x

    dtype = x2d.dtype
    itemsize = jnp.dtype(dtype).itemsize
    lowp = jnp.issubdtype(dtype, jnp.floating) and itemsize == 2
    kernel = _norm_kernel_lowp if lowp else _norm_kernel_f32
    inter_itemsize = itemsize if lowp else 4

    # Sublane-packing multiple: 8 for 32-bit, 16 for 16-bit, 32 for 8-bit.
    mult = max(8, 32 // max(1, itemsize))
    # Per-row VMEM cost: pipelined in/out tiles in the input dtype plus ~2
    # full-tile compute intermediates (f32 path) or native-dtype intermediates
    # (low-precision path).
    bytes_per_row = D * ((_IN_BUFS + _OUT_BUFS) * itemsize + 2 * inter_itemsize)

    tile_rows = _pick_tile_rows(R, bytes_per_row, mult)
    if tile_rows is None:
        # TODO(synk): very large feature dims need a feature-tiled two-pass
        # Pallas kernel (partial-sumsq accumulator + rescale pass); fall back
        # to plain JAX rather than exceeding VMEM.
        s = jnp.asarray(norm_s, dtype=jnp.float32)
        xf = x.astype(jnp.float32)
        out = s * xf * lax.rsqrt(jnp.sum(xf * xf, axis=-1, keepdims=True))
        return out.astype(x.dtype)

    num_tiles = pl.cdiv(R, tile_rows)
    tile_bytes = tile_rows * D * itemsize

    # Scoped-VMEM budget: all pipeline buffers + ~3 tiles of intermediate
    # headroom, capped so it stays valid on v7x (64 MiB physical VMEM).
    vmem_limit = int(min(
        _VMEM_LIMIT_CAP,
        max(4 * 1024 * 1024,
            (_IN_BUFS + _OUT_BUFS) * tile_bytes
            + 3 * tile_rows * D * inter_itemsize
            + (1 << 20)),
    ))

    if num_tiles >= 3:
        x_spec = pl.BlockSpec((tile_rows, D), lambda i: (i, 0),
                              pipeline_mode=pl.Buffered(_IN_BUFS))
    else:
        x_spec = pl.BlockSpec((tile_rows, D), lambda i: (i, 0))

    s = jnp.asarray(norm_s, dtype=jnp.float32).reshape((1,))

    out = pl.pallas_call(
        kernel,
        out_shape=jax.ShapeDtypeStruct((R, D), dtype),
        grid_spec=pl.GridSpec(
            grid=(num_tiles,),
            in_specs=[
                pl.BlockSpec(memory_space=pltpu.MemorySpace.SMEM),
                x_spec,
            ],
            out_specs=pl.BlockSpec((tile_rows, D), lambda i: (i, 0)),
        ),
        compiler_params=pltpu.CompilerParams(
            # "parallel" lets the row axis shard across v7x's two TensorCores.
            # TODO(synk): if profiling shows single-core execution on v7x,
            # switch to pltpu.CORE_PARALLEL / a core_map over a 2-TC mesh.
            dimension_semantics=("parallel",),
            vmem_limit_bytes=vmem_limit,
        ),
    )(s, x2d)

    # TODO(synk): for feature dims < 128 that divide 128, a lane-dense
    # repacking (128//D rows per lane group + segmented reduce) would recover
    # lane utilization; production D >= 128 needs no change.
    return out.reshape(orig_shape)


if __name__ == "__main__":
    key = jax.random.PRNGKey(0)
    # Small shape consistent with the module: (batch, seq, hidden)
    batch, seq, hidden = 2, 8, 32
    x = jax.random.normal(key, (batch, seq, hidden), dtype=jnp.float32)

    # Deterministic parameter init matching __init__(normalize_scale=1.0,
    # learn_scale=True): a single learnable scalar initialized to 1.0.
    norm_s = jnp.float32(1.0)

    # f32 path
    y = jax.block_until_ready(normalization_layer(x, norm_s))
    ref = norm_s * x / jnp.linalg.norm(x, axis=-1, keepdims=True)
    assert y.shape == x.shape
    assert jnp.allclose(y, ref, atol=1e-5, rtol=1e-5)

    # Low-precision (bf16) path
    xb = x.astype(jnp.bfloat16)
    yb = jax.block_until_ready(normalization_layer(xb, norm_s))
    xf = xb.astype(jnp.float32)
    refb = norm_s * xf / jnp.linalg.norm(xf, axis=-1, keepdims=True)
    assert yb.shape == xb.shape
    assert jnp.allclose(yb.astype(jnp.float32), refb, atol=3e-2, rtol=3e-2)

    print("KERNEL_OK")
</pallas_src>

<mosaic_0001>
module attributes {stable_mosaic.version = 11 : i64} {
  func.func @_norm_kernel_f32(%arg0: i32, %arg1: memref<1xf32, #tpu.memory_space<smem>>, %arg2: memref<16x32xf32, #tpu.memory_space<vmem>>, %arg3: memref<16x32xf32, #tpu.memory_space<vmem>>) attributes {dimension_semantics = [#tpu.dimension_semantics<parallel>], iteration_bounds = array<i64: 1>, scalar_prefetch = 0 : i64, scratch_operands = 0 : i64, tpu.core_type = #tpu.core_type<tc>, window_params = [{transform_indices = @transform_0, window_bounds = array<i64: 1>}, {transform_indices = @transform_1, window_bounds = array<i64: 16, 32>}, {transform_indices = @transform_2, window_bounds = array<i64: 16, 32>}]} {
    %c0 = arith.constant 0 : index
    %0 = memref.load %arg1[%c0] : memref<1xf32, #tpu.memory_space<smem>>
    %c0_0 = arith.constant 0 : index
    %c0_1 = arith.constant 0 : index
    %1 = vector.load %arg2[%c0_0, %c0_1] : memref<16x32xf32, #tpu.memory_space<vmem>>, vector<16x32xf32>
    %2 = arith.mulf %1, %1 : vector<16x32xf32>
    %cst = arith.constant dense<0.000000e+00> : vector<16xf32>
    %3 = vector.multi_reduction <add>, %2, %cst [1] : vector<16x32xf32> to vector<16xf32>
    %4 = vector.shape_cast %3 : vector<16xf32> to vector<16x1xf32>
    %5 = math.rsqrt %4 : vector<16x1xf32>
    %6 = vector.broadcast %0 : f32 to vector<16x1xf32>
    %7 = arith.mulf %6, %5 : vector<16x1xf32>
    %8 = vector.broadcast %7 : vector<16x1xf32> to vector<16x32xf32>
    %9 = arith.mulf %1, %8 : vector<16x32xf32>
    %c0_2 = arith.constant 0 : index
    %c0_3 = arith.constant 0 : index
    %10 = vector.load %arg3[%c0_2, %c0_3] : memref<16x32xf32, #tpu.memory_space<vmem>>, vector<16x32xf32>
    tpu.vector_store %arg3[%c0_2, %c0_3], %9 {strides = array<i32>} : memref<16x32xf32, #tpu.memory_space<vmem>>, vector<16x32xf32>,
    return
  }
  func.func @transform_0(%arg0: i32) -> i32 {
    %c0_i32 = arith.constant 0 : i32
    %c0_i32_0 = arith.constant 0 : i32
    return %c0_i32 : i32
  }
  func.func @transform_1(%arg0: i32) -> (i32, i32) {
    %c0_i32 = arith.constant 0 : i32
    %c0_i32_0 = arith.constant 0 : i32
    return %arg0, %c0_i32 : i32, i32
  }
  func.func @transform_2(%arg0: i32) -> (i32, i32) {
    %c0_i32 = arith.constant 0 : i32
    %c0_i32_0 = arith.constant 0 : i32
    return %arg0, %c0_i32 : i32, i32
  }
}

</mosaic_0001>

<bundles_post_ra>
// kernel: tpu_custom_call.1
= control target key start
LH: loop header
LB: loop body
LE: loop exit
PB: predicated region body
PF: predicated region fallthrough
CT: control target
= control target key end

     0   :  { %8 = vsyncpa [#allocation4], 0  ;;  %s177_s0 = inlined_call_operand.<no memory space> [shape: f32[1], index: 0, kind: input, shape index: {}]   ;;  %s178_s1 = inlined_call_operand.hbm [shape: f32[16,32], index: 1, kind: input, shape index: {}]   ;;  %s179_s2 = inlined_call_operand.hbm [shape: f32[16,32], index: 2, kind: output, shape index: {}]  }
   0x1   :  { %9 = vsyncpa [#allocation5], 0  ;;  %s121_s9 = smov [#allocation3]   ;;  %s73_s13 = scalar_lea.hbm %s178_s1, 256 }
   0x2   :  { %s17_s10 = sshll.u32 %s121_s9, 4  ;;  %p74_p0 = scmp.ne.s32.totalorder %s178_s1, %s73_s13  ;;  %s18_s10 = int_to_ptr.vmem [resolvable:$true] %s17_s10 }
   0x3   :  { %p77_p1 = scmp.lt.u32.totalorder %s73_s13, %s178_s1 }
   0x5   :  { %p79_p2 = pnand %p77_p1, %p74_p0 }
   0x7   :  { %82 = shalt.err (!%p79_p2)
}
   0x8   :  { %s83_s18 = scalar_lea.vmem %s18_s10, 256  ;;  %p88_p4 = scmp.lt.s32.totalorder %s18_s10, %s18_s10 }
   0x9   :  { %p84_p3 = scmp.ne.s32.totalorder %s18_s10, %s83_s18  ;;  %p89_p5 = scmp.lt.s32.totalorder %s83_s18, %s83_s18 }
   0xb   :  { %p90_p6 = por %p89_p5, %p88_p4 }
   0xd   :  { %p91_p7 = pnand %p90_p6, %p84_p3 }
   0xf   :  { %94 = shalt.err (!%p91_p7)
}
  0x10   :  { %s122_s19 = smov 128   ;;  %s123_s20 = smov 8  }
  0x11   :  { %23 = dma.hbm_to_vmem [thread:$0]  %s178_s1, 256, %s18_s10, [#allocation4], %s122_s19, %s122_s19, %s123_s20  }
  0x12   :  { %117 = dma.done.wait [#allocation4], 256  }
  0x13   :  { %118 = vsyncadd [#allocation4], 4294967040  ;;  %v28_v0 = vld [vmem:[#allocation3] sm:$0xff]  ;;  %vm32_vm0 = vcmask 261120   ;;  %v29_v1 = vld [vmem:[#allocation3 + $0x8] sm:$0xff]  ;;  %v41_v8 = vstv %s177_s0  ;;  %s124_s1 = smov [#allocation6]  }
  0x14   :  { %v30_v2 = vmul.f32 %v28_v0, %v28_v0  ;;  %v31_v3 = vmul.f32 %v29_v1, %v29_v1  ;;  %s53_s25 = sshll.u32 %s124_s1, 4  ;;  %s54_s25 = int_to_ptr.vmem [resolvable:$true] %s53_s25 }
  0x15   :  { %s95_s26 = scalar_lea.vmem %s54_s25, 256  ;;  %p100_p9 = scmp.lt.s32.totalorder %s54_s25, %s54_s25 }
  0x16   :  { %v33_v4 = vsel %vm32_vm0, %v30_v2, 0.0  ;;  %v36_v5 = vsel %vm32_vm0, %v31_v3, 0.0  ;;  %p96_p8 = scmp.ne.s32.totalorder %s54_s25, %s95_s26  ;;  %p101_p10 = scmp.lt.s32.totalorder %s95_s26, %s95_s26 }
  0x17   :  { %34 = vadd.xlane.f32.xlu0 %v33_v4 }
  0x18   :  { %p102_p11 = por %p101_p10, %p100_p9 }
  0x1a   :  { %p103_p12 = pnand %p102_p11, %p96_p8 }
  0x1b   :  { %37 = vadd.xlane.f32.xlu0 %v36_v5 }
  0xa4   :  { %v35_v6 = vpop.xlane.xlu0 %34 }
  0xa5   :  { %69 = vrsqrt.f32 %v35_v6 }
  0xa8   :  { %v38_v7 = vpop.xlane.xlu0 %37 }
  0xa9   :  { %71 = vrsqrt.f32 %v38_v7 }
  0xaf   :  { %v70_v9 = vpop.eup %69 }
  0xb0   :  { %v42_v10 = vmul.f32 %v70_v9, %v41_v8 }
  0xb2   :  { %v44_v11 = vmul.f32 %v42_v10, %v28_v0 }
  0xb3   :  { %v72_v12 = vpop.eup %71 }
  0xb4   :  { %v43_v13 = vmul.f32 %v72_v12, %v41_v8  ;;  %46 = vst.msk [vmem:[#allocation6] sm:$0xff] %vm32_vm0, %v44_v11 }
  0xb6   :  { %v45_v14 = vmul.f32 %v43_v13, %v29_v1 }
  0xb8   :  { %47 = vst.msk [vmem:[#allocation6 + $0x8] sm:$0xff] %vm32_vm0, %v45_v14 }
  0xb9   :  { %106 = shalt.err (!%p103_p12)
}
  0xba   :  { %s107_s28 = scalar_lea.hbm %s179_s2, 256 }
  0xbb   :  { %p108_p13 = scmp.ne.s32.totalorder %s179_s2, %s107_s28  ;;  %p111_p0 = scmp.lt.u32.totalorder %s107_s28, %s179_s2 }
  0xbd   :  { %p113_p1 = pnand %p111_p0, %p108_p13 }
  0xbf   :  { %116 = shalt.err (!%p113_p1)
}
  0xc0   :  { %59 = dma.vmem_to_hbm [thread:$0]  %s54_s25, 256, %s179_s2, [#allocation5], %s122_s19, %s122_s19, %s123_s20  }
  0xc1   :  { %119 = dma.done.wait [#allocation5], 256  }
  0xc2   :  { %120 = vsyncadd [#allocation5], 4294967040 }
  0xc3   :  { %63 = vsyncpa [#allocation4], 1 }
  0xc4   :  { %64 = vsyncpa [#allocation5], 1 }

</bundles_post_ra>
